<compile_context>
chip_gen: v5e
topology: v5e:2x2
jax: 0.10.0
libtpu: 0.0.40
codegen_flags: <defaults>
</compile_context>

<pallas_src>
import jax
import jax.numpy as jnp
from jax.experimental import pallas as pl
from jax.experimental.pallas import tpu as pltpu


def _round_up(n, m):
    return ((n + m - 1) // m) * m


# ----------------------------- Pallas kernel ------------------------------- #
def _mlp_kernel(x_ref, w1_ref, wh_ref, bh_ref, w3_ref, b3_ref, o_ref):
    """Batch-on-lanes MLP: all activations are lane-dense (32, TB) slabs."""
    # Hoist the four bias columns once; each is (32, 1), broadcast over lanes.
    b1 = bh_ref[:, 0:1]
    b2 = bh_ref[:, 1:2]
    b21 = bh_ref[:, 2:3]
    b22 = bh_ref[:, 3:4]

    # fc1 (embedding pre-folded into b1) + relu1:  (32,13) @ (13,TB) -> (32,TB)
    h = jnp.dot(w1_ref[...], x_ref[...], preferred_element_type=jnp.float32)
    h = jnp.maximum(h + b1, 0.0)
    # fc2 + relu2
    h = jnp.dot(wh_ref[0], h, preferred_element_type=jnp.float32)
    h = jnp.maximum(h + b2, 0.0)
    # fc21 + relu21
    h = jnp.dot(wh_ref[1], h, preferred_element_type=jnp.float32)
    h = jnp.maximum(h + b21, 0.0)
    # fc22 + relu22
    h = jnp.dot(wh_ref[2], h, preferred_element_type=jnp.float32)
    h = jnp.maximum(h + b22, 0.0)
    # fc3 + sigmoid: (1,32) @ (32,TB) -> lane-dense (1,TB) row
    z = jnp.dot(w3_ref[...], h, preferred_element_type=jnp.float32) + b3_ref[...]
    o_ref[...] = jax.nn.sigmoid(z)


# --------------------------- parameter prep -------------------------------- #
def prepare_kernel_params(params):
    """Fold the embedding into fc1's bias, transpose and coalesce parameters."""
    w1 = params["w1"]                                 # (16, 32)
    emb = params["embedding"]                         # (1, 3)
    w1_t = w1[:13, :].T                               # (32, 13)  fc1^T (x part)
    b1_eff = emb @ w1[13:, :] + params["b1"]          # (1, 32)   embedding folded in

    # Hidden weights, transposed, stacked: (3, 32, 32)
    wh_t = jnp.stack(
        [params["w2"].T, params["w21"].T, params["w22"].T], axis=0)
    # Bias columns: (32, 4); column 0 = embedding-folded fc1 bias.
    bh_t = jnp.concatenate(
        [b1_eff, params["b2"], params["b21"], params["b22"]], axis=0).T

    w3_t = params["w3"].T                             # (1, 32)
    b3 = params["b3"]                                 # (1, 1)
    return w1_t, wh_t, bh_t, w3_t, b3


# ------------------------------ wrapper ------------------------------------ #
def nn_w_embedding_forward(x, params, *, block_b=512):
    """
    x: (B, 13) float32
    params: dict with keys w1,b1,w2,b2,w21,b21,w22,b22,w3,b3,embedding
    returns: (B, 1) float32 in (0, 1)   (embedding broadcast over the batch)
    """
    B, F = x.shape
    assert F == 13, "NNwEmbedding expects 13 input features (+3 embedding)"

    w1_t, wh_t, bh_t, w3_t, b3 = prepare_kernel_params(params)

    # Batch-on-lanes input (layout plumbing only): (13, B), contiguous rows.
    x_t = x.T

    # Batch tile: multiple of 128, capped near B for small batches.  Ragged
    # tails are handled by Pallas partial-block masking (no jnp.pad copy).
    tb = min(block_b, _round_up(B, 128))
    n_blocks = pl.cdiv(B, tb)

    out = pl.pallas_call(
        _mlp_kernel,
        out_shape=jax.ShapeDtypeStruct((1, B), jnp.float32),
        grid=(n_blocks,),
        in_specs=[
            # activations: tiled over the batch (lane) axis
            pl.BlockSpec((13, tb), lambda i: (0, i)),
            # parameters: constant index_maps -> DMA'd once, VMEM-resident
            pl.BlockSpec((32, 13), lambda i: (0, 0)),          # fc1^T
            pl.BlockSpec((3, 32, 32), lambda i: (0, 0, 0)),    # fc2/21/22^T
            pl.BlockSpec((32, 4), lambda i: (0, 0)),           # bias columns
            pl.BlockSpec((1, 32), lambda i: (0, 0)),           # fc3^T
            pl.BlockSpec((1, 1), lambda i: (0, 0)),            # fc3 bias
        ],
        out_specs=pl.BlockSpec((1, tb), lambda i: (0, i)),
        compiler_params=pltpu.CompilerParams(
            dimension_semantics=("parallel",)),  # megacore-shard batch on v7x
    )(x_t, w1_t, wh_t, bh_t, w3_t, b3)

    # Lane-dense (1, B) row -> (B, 1) to match the PyTorch module's output.
    return out.reshape(B, 1)


# -------------------------- deterministic params --------------------------- #
def init_params(key):
    """Deterministic synthetic init mimicking the PyTorch module's shapes."""
    def linear(key, fan_in, fan_out):
        kw, kb = jax.random.split(key)
        bound = 1.0 / jnp.sqrt(fan_in)
        # stored as (in_features, out_features) so reference computes x @ W + b
        w = jax.random.uniform(kw, (fan_in, fan_out), jnp.float32, -bound, bound)
        b = jax.random.uniform(kb, (1, fan_out), jnp.float32, -bound, bound)
        return w, b

    keys = jax.random.split(key, 6)
    w1, b1 = linear(keys[0], 16, 32)
    w2, b2 = linear(keys[1], 32, 32)
    w21, b21 = linear(keys[2], 32, 32)
    w22, b22 = linear(keys[3], 32, 32)
    w3, b3 = linear(keys[4], 32, 1)
    embedding = jax.random.normal(keys[5], (1, 3), jnp.float32)  # nn.Parameter(randn(1,3))
    return dict(w1=w1, b1=b1, w2=w2, b2=b2, w21=w21, b21=b21,
                w22=w22, b22=b22, w3=w3, b3=b3, embedding=embedding)


# ------------------------------ reference ---------------------------------- #
def reference_forward(x, p):
    B = x.shape[0]
    emb = jnp.broadcast_to(p["embedding"], (B, 3))
    h = jnp.concatenate([x, emb], axis=1)
    h = jnp.maximum(h @ p["w1"] + p["b1"], 0.0)
    h = jnp.maximum(h @ p["w2"] + p["b2"], 0.0)
    h = jnp.maximum(h @ p["w21"] + p["b21"], 0.0)
    h = jnp.maximum(h @ p["w22"] + p["b22"], 0.0)
    z = h @ p["w3"] + p["b3"]
    return jax.nn.sigmoid(z)


if __name__ == "__main__":
    key = jax.random.PRNGKey(0)
    k_x, k_p = jax.random.split(key)

    # 13 raw input features (fc1 expects 16 = 13 + 3-dim embedding).
    # B=1024 with block_b=512 -> 2 parallel grid blocks (both v7x TCs busy).
    B = 1024
    x = jax.random.normal(k_x, (B, 13), jnp.float32)
    params = init_params(k_p)

    out = nn_w_embedding_forward(x, params)
    out = jax.block_until_ready(out)

    ref = reference_forward(x, params)
    assert out.shape == (B, 1)
    assert jnp.allclose(out, ref, atol=1e-5, rtol=1e-5), (out[:4], ref[:4])
    print("KERNEL_OK")
</pallas_src>

<mosaic_0001>
module attributes {stable_mosaic.version = 11 : i64} {
  func.func @_mlp_kernel(%arg0: i32, %arg1: memref<13x512xf32, #tpu.memory_space<vmem>>, %arg2: memref<32x13xf32, #tpu.memory_space<vmem>>, %arg3: memref<3x32x32xf32, #tpu.memory_space<vmem>>, %arg4: memref<32x4xf32, #tpu.memory_space<vmem>>, %arg5: memref<1x32xf32, #tpu.memory_space<vmem>>, %arg6: memref<1x1xf32, #tpu.memory_space<vmem>>, %arg7: memref<1x512xf32, #tpu.memory_space<vmem>>) attributes {dimension_semantics = [#tpu.dimension_semantics<parallel>], iteration_bounds = array<i64: 2>, scalar_prefetch = 0 : i64, scratch_operands = 0 : i64, tpu.core_type = #tpu.core_type<tc>, window_params = [{transform_indices = @transform_0, window_bounds = array<i64: 13, 512>}, {pipeline_mode = #tpu.pipeline_mode<synchronous>, transform_indices = @transform_1, window_bounds = array<i64: 32, 13>}, {pipeline_mode = #tpu.pipeline_mode<synchronous>, transform_indices = @transform_2, window_bounds = array<i64: 3, 32, 32>}, {pipeline_mode = #tpu.pipeline_mode<synchronous>, transform_indices = @transform_3, window_bounds = array<i64: 32, 4>}, {pipeline_mode = #tpu.pipeline_mode<synchronous>, transform_indices = @transform_4, window_bounds = array<i64: 1, 32>}, {pipeline_mode = #tpu.pipeline_mode<synchronous>, transform_indices = @transform_5, window_bounds = array<i64: 1, 1>}, {transform_indices = @transform_6, window_bounds = array<i64: 1, 512>}]} {
    %c0 = arith.constant 0 : index
    %c0_0 = arith.constant 0 : index
    %0 = vector.load %arg4[%c0, %c0_0] : memref<32x4xf32, #tpu.memory_space<vmem>>, vector<32x1xf32>
    %c0_1 = arith.constant 0 : index
    %c1 = arith.constant 1 : index
    %1 = vector.load %arg4[%c0_1, %c1] : memref<32x4xf32, #tpu.memory_space<vmem>>, vector<32x1xf32>
    %c0_2 = arith.constant 0 : index
    %c2 = arith.constant 2 : index
    %2 = vector.load %arg4[%c0_2, %c2] : memref<32x4xf32, #tpu.memory_space<vmem>>, vector<32x1xf32>
    %c0_3 = arith.constant 0 : index
    %c3 = arith.constant 3 : index
    %3 = vector.load %arg4[%c0_3, %c3] : memref<32x4xf32, #tpu.memory_space<vmem>>, vector<32x1xf32>
    %c0_4 = arith.constant 0 : index
    %c0_5 = arith.constant 0 : index
    %4 = vector.load %arg2[%c0_4, %c0_5] : memref<32x13xf32, #tpu.memory_space<vmem>>, vector<32x13xf32>
    %c0_6 = arith.constant 0 : index
    %c0_7 = arith.constant 0 : index
    %5 = vector.load %arg1[%c0_6, %c0_7] : memref<13x512xf32, #tpu.memory_space<vmem>>, vector<13x512xf32>
    %cst = arith.constant dense<0.000000e+00> : vector<32x512xf32>
    %6 = tpu.matmul %4, %5, %cst {dimension_numbers = #tpu.dot_dimension_numbers<[1], [0], [0], [1], [0, 0, 1, 1], [], []>} : vector<32x13xf32>, vector<13x512xf32>, vector<32x512xf32> -> vector<32x512xf32>
    %7 = vector.broadcast %0 : vector<32x1xf32> to vector<32x512xf32>
    %8 = arith.addf %6, %7 : vector<32x512xf32>
    %cst_8 = arith.constant 0.000000e+00 : f32
    %9 = vector.broadcast %cst_8 : f32 to vector<32x512xf32>
    %10 = arith.maximumf %8, %9 : vector<32x512xf32>
    %c0_9 = arith.constant 0 : index
    %c0_10 = arith.constant 0 : index
    %c0_11 = arith.constant 0 : index
    %11 = vector.load %arg3[%c0_9, %c0_10, %c0_11] : memref<3x32x32xf32, #tpu.memory_space<vmem>>, vector<1x32x32xf32>
    %12 = vector.shape_cast %11 : vector<1x32x32xf32> to vector<32x32xf32>
    %cst_12 = arith.constant dense<0.000000e+00> : vector<32x512xf32>
    %13 = tpu.matmul %12, %10, %cst_12 {dimension_numbers = #tpu.dot_dimension_numbers<[1], [0], [0], [1], [0, 0, 1, 1], [], []>} : vector<32x32xf32>, vector<32x512xf32>, vector<32x512xf32> -> vector<32x512xf32>
    %14 = vector.broadcast %1 : vector<32x1xf32> to vector<32x512xf32>
    %15 = arith.addf %13, %14 : vector<32x512xf32>
    %cst_13 = arith.constant 0.000000e+00 : f32
    %16 = vector.broadcast %cst_13 : f32 to vector<32x512xf32>
    %17 = arith.maximumf %15, %16 : vector<32x512xf32>
    %c1_14 = arith.constant 1 : index
    %c0_15 = arith.constant 0 : index
    %c0_16 = arith.constant 0 : index
    %18 = vector.load %arg3[%c1_14, %c0_15, %c0_16] : memref<3x32x32xf32, #tpu.memory_space<vmem>>, vector<1x32x32xf32>
    %19 = vector.shape_cast %18 : vector<1x32x32xf32> to vector<32x32xf32>
    %cst_17 = arith.constant dense<0.000000e+00> : vector<32x512xf32>
    %20 = tpu.matmul %19, %17, %cst_17 {dimension_numbers = #tpu.dot_dimension_numbers<[1], [0], [0], [1], [0, 0, 1, 1], [], []>} : vector<32x32xf32>, vector<32x512xf32>, vector<32x512xf32> -> vector<32x512xf32>
    %21 = vector.broadcast %2 : vector<32x1xf32> to vector<32x512xf32>
    %22 = arith.addf %20, %21 : vector<32x512xf32>
    %cst_18 = arith.constant 0.000000e+00 : f32
    %23 = vector.broadcast %cst_18 : f32 to vector<32x512xf32>
    %24 = arith.maximumf %22, %23 : vector<32x512xf32>
    %c2_19 = arith.constant 2 : index
    %c0_20 = arith.constant 0 : index
    %c0_21 = arith.constant 0 : index
    %25 = vector.load %arg3[%c2_19, %c0_20, %c0_21] : memref<3x32x32xf32, #tpu.memory_space<vmem>>, vector<1x32x32xf32>
    %26 = vector.shape_cast %25 : vector<1x32x32xf32> to vector<32x32xf32>
    %cst_22 = arith.constant dense<0.000000e+00> : vector<32x512xf32>
    %27 = tpu.matmul %26, %24, %cst_22 {dimension_numbers = #tpu.dot_dimension_numbers<[1], [0], [0], [1], [0, 0, 1, 1], [], []>} : vector<32x32xf32>, vector<32x512xf32>, vector<32x512xf32> -> vector<32x512xf32>
    %28 = vector.broadcast %3 : vector<32x1xf32> to vector<32x512xf32>
    %29 = arith.addf %27, %28 : vector<32x512xf32>
    %cst_23 = arith.constant 0.000000e+00 : f32
    %30 = vector.broadcast %cst_23 : f32 to vector<32x512xf32>
    %31 = arith.maximumf %29, %30 : vector<32x512xf32>
    %c0_24 = arith.constant 0 : index
    %c0_25 = arith.constant 0 : index
    %32 = vector.load %arg5[%c0_24, %c0_25] : memref<1x32xf32, #tpu.memory_space<vmem>>, vector<1x32xf32>
    %cst_26 = arith.constant dense<0.000000e+00> : vector<1x512xf32>
    %33 = tpu.matmul %32, %31, %cst_26 {dimension_numbers = #tpu.dot_dimension_numbers<[1], [0], [0], [1], [0, 0, 1, 1], [], []>} : vector<1x32xf32>, vector<32x512xf32>, vector<1x512xf32> -> vector<1x512xf32>
    %c0_27 = arith.constant 0 : index
    %c0_28 = arith.constant 0 : index
    %34 = vector.load %arg6[%c0_27, %c0_28] : memref<1x1xf32, #tpu.memory_space<vmem>>, vector<1x1xf32>
    %35 = vector.broadcast %34 : vector<1x1xf32> to vector<1x512xf32>
    %36 = arith.addf %33, %35 : vector<1x512xf32>
    %37 = arith.negf %36 : vector<1x512xf32>
    %38 = math.exp %37 : vector<1x512xf32>
    %cst_29 = arith.constant 1.000000e+00 : f32
    %39 = vector.broadcast %cst_29 : f32 to vector<1x512xf32>
    %40 = arith.addf %39, %38 : vector<1x512xf32>
    %41 = arith.divf %39, %40 : vector<1x512xf32>
    %c0_30 = arith.constant 0 : index
    %c0_31 = arith.constant 0 : index
    %42 = vector.load %arg7[%c0_30, %c0_31] : memref<1x512xf32, #tpu.memory_space<vmem>>, vector<1x512xf32>
    tpu.vector_store %arg7[%c0_30, %c0_31], %41 {strides = array<i32>} : memref<1x512xf32, #tpu.memory_space<vmem>>, vector<1x512xf32>,
    return
  }
  func.func @transform_0(%arg0: i32) -> (i32, i32) {
    %c0_i32 = arith.constant 0 : i32
    %c0_i32_0 = arith.constant 0 : i32
    return %c0_i32, %arg0 : i32, i32
  }
  func.func @transform_1(%arg0: i32) -> (i32, i32) {
    %c0_i32 = arith.constant 0 : i32
    %c0_i32_0 = arith.constant 0 : i32
    %c0_i32_1 = arith.constant 0 : i32
    return %c0_i32, %c0_i32_0 : i32, i32
  }
  func.func @transform_2(%arg0: i32) -> (i32, i32, i32) {
    %c0_i32 = arith.constant 0 : i32
    %c0_i32_0 = arith.constant 0 : i32
    %c0_i32_1 = arith.constant 0 : i32
    %c0_i32_2 = arith.constant 0 : i32
    return %c0_i32, %c0_i32_0, %c0_i32_1 : i32, i32, i32
  }
  func.func @transform_3(%arg0: i32) -> (i32, i32) {
    %c0_i32 = arith.constant 0 : i32
    %c0_i32_0 = arith.constant 0 : i32
    %c0_i32_1 = arith.constant 0 : i32
    return %c0_i32, %c0_i32_0 : i32, i32
  }
  func.func @transform_4(%arg0: i32) -> (i32, i32) {
    %c0_i32 = arith.constant 0 : i32
    %c0_i32_0 = arith.constant 0 : i32
    %c0_i32_1 = arith.constant 0 : i32
    return %c0_i32, %c0_i32_0 : i32, i32
  }
  func.func @transform_5(%arg0: i32) -> (i32, i32) {
    %c0_i32 = arith.constant 0 : i32
    %c0_i32_0 = arith.constant 0 : i32
    %c0_i32_1 = arith.constant 0 : i32
    return %c0_i32, %c0_i32_0 : i32, i32
  }
  func.func @transform_6(%arg0: i32) -> (i32, i32) {
    %c0_i32 = arith.constant 0 : i32
    %c0_i32_0 = arith.constant 0 : i32
    return %c0_i32, %arg0 : i32, i32
  }
}

</mosaic_0001>

<bundles_post_ra>
// kernel: tpu_custom_call.1
= control target key start
LH: loop header
LB: loop body
LE: loop exit
PB: predicated region body
PF: predicated region fallthrough
CT: control target
= control target key end

     0   :  { %s1939_s0 = inlined_call_operand.hbm [shape: f32[13,1024], index: 0, kind: input, shape index: {}]   ;;  %s1940_s1 = inlined_call_operand.vmem [shape: f32[32,13], index: 1, kind: input, shape index: {}]   ;;  %s1941_s2 = inlined_call_operand.hbm [shape: f32[3,32,32], index: 2, kind: input, shape index: {}]   ;;  %s1942_s3 = inlined_call_operand.vmem [shape: f32[32,4], index: 3, kind: input, shape index: {}]   ;;  %s1943_s4 = inlined_call_operand.vmem [shape: f32[1,32], index: 4, kind: input, shape index: {}]   ;;  %s1944_s5 = inlined_call_operand.<no memory space> [shape: f32[1,1], index: 5, kind: input, shape index: {}]   ;;  %s1945_s6 = inlined_call_operand.hbm [shape: f32[1,1024], index: 6, kind: output, shape index: {}]  }
   0x1   :  { %v11_v0 = vstv %s1944_s5 }
   0x2   :  { %12 = vst [vmem:[#allocation2] sm:$0x1] %v11_v0 }
   0x3   :  { %13 = vsyncpa [#allocation4], 0 }
   0x4   :  { %15 = vsyncpa [#allocation4 + $0x1], 0 }
   0x5   :  { %16 = vsyncpa [#allocation7], 0 }
   0x6   :  { %17 = vsyncpa [#allocation5], 0 }
   0x7   :  { %19 = vsyncpa [#allocation5 + $0x1], 0  ;;  %s1629_s23 = smov 0   ;;  %s1631_s24 = smov 0  }
   0x8   :  { %s1633_s25 = smov 0   ;;  %s1635_s26 = smov 0  }
   0x9 LB: > { %s1650_s5 = sadd.s32 4294967295, %s1579_s26   ;;  %s1264_s27 = sadd.s32 4294967294, %s1579_s26   ;;  %s1579_s26 = sphi %s1635_s26, %s1963_s26   ;;  %s1575_s25 = sphi %s1633_s25, %s1962_s25   ;;  %s1571_s24 = sphi %s1631_s24, %s1961_s24   ;;  %s1567_s23 = sphi %s1629_s23, %s1960_s23  }
   0xa   : > { %p45_p0 = scmp.ne.s32.totalorder %s1571_s24, %s1567_s23  ;;  %p46_p1 = scmp.eq.s32.totalorder %s1650_s5, 0 }
   0xb   : > { %p174_p2 = scmp.eq.s32.totalorder %s1650_s5, 1  ;;  %p180_p3 = scmp.eq.s32.totalorder %s1264_s27, 1 }
   0xc   : > { %p1659_p4 = por %p46_p1, %p45_p0  ;;  %p1265_p5 = scmp.ge.s32.totalorder %s1579_s26, 1 }
   0xd   : > { %p1664_p6 = por %p180_p3, %p45_p0  ;;  %p187_p7 = scmp.lt.s32.totalorder %s1579_s26, 3 }
   0xe   : > { %s201_s8 = sshll.u32 %s1941_s2, 4  ;;  %s1581_s10 = smov [#allocation6]   ;;  %s202_s8 = int_to_ptr.hbm [resolvable:$true] %s201_s8 }
   0xf   : > { %p1672_p8 = pnand %p1265_p5, %p187_p7  ;;  %s203_s11 = sshll.u32 %s1581_s10, 4  ;;  %s204_s11 = int_to_ptr.vmem [resolvable:$true] %s203_s11 }
  0x10   : > { %s1682_s12 = sadd.s32 1, %s1579_s26   ;;  %s1582_s13 = smov 128  }
  0x11   : > { %p1364_p9 = pneg %p1672_p8  ;;  %s1583_s14 = smov 8  }
  0x12   : > { %s29_s15 = ssub.s32 %s1579_s26, %s1682_s12  ;;  %s32_s16 = sadd.s32 1, %s1575_s25 }
  0x13   : > { %p1365_p10 = pnand %p1364_p9, %p46_p1  ;;  %p30_p12 = scmp.eq.s32.totalorder %s29_s15, 0 }
  0x14   : > { %p39_p13 = scmp.ne.s32.totalorder %s1575_s25, %s1571_s24  ;;  %p40_p0 = scmp.eq.s32.totalorder %s1579_s26, 0 }
  0x15   : > { %1367 = dma.hbm_to_vmem [thread:$0]  (!%p1365_p10), %s202_s8, 1536, %s204_s11, [#allocation7], %s1582_s13, %s1582_s13, %s1583_s14  }
  0x16   : > { %p1377_p3 = scmp.lt.s32.totalorder %s1579_s26, 2  ;;  %p41_p5 = por %p40_p0, %p39_p13 }
  0x17   : > { %s1692_s17 = scalar_select %p30_p12, %s1575_s25, %s32_s16  }
  0x18   : > { %p1696_p7 = por %p174_p2, %p39_p13  ;;  %s226_s19 = sand.u32 1, %s1575_s25  }
  0x19   : > { %s1355_s20 = sshll.u32 %s1579_s26, 5  ;;  %s1268_s21 = sshll.u32 %s226_s19, 6 }
  0x1a   : > { %s235_s30 = scalar_lea.hbm %s1939_s0, %s1355_s20  ;;  %s230_s8 = scalar_lea.vmem [#allocation3], %s1268_s21 }
  0x1b   : > { %s236_s7 = sshll.u32 %s235_s30, 4  ;;  %s238_s10 = sshll.u32 %s230_s8, 4  ;;  %s237_s7 = int_to_ptr.hbm [resolvable:$true] %s236_s7  ;;  %s239_s10 = int_to_ptr.vmem [resolvable:$true] %s238_s10 }
  0x1c   : > { %p1707_p9 = pnand %p1377_p3, %p41_p5  ;;  %s227_s13 = scalar_lea.sflag [#allocation4], %s226_s19 }
  0x1d   : > { %s1479_s14 = sshra.s32 %s237_s7, 4  ;;  %s1486_s21 = scalar_lea.hbm %s1939_s0, 128  ;;  %s1480_s14 = int_to_ptr.hbm [resolvable:$true] %s1479_s14 }
  0x1e   : > { %s1481_s15 = scalar_lea.hbm %s1480_s14, 64  ;;  %p1483_p10 = pneg %p1707_p9 }
  0x1f   : > { %p1482_p2 = scmp.ne.s32.totalorder %s1480_s14, %s1481_s15  ;;  %p1487_p0 = scmp.lt.s32.totalorder %s1480_s14, %s1939_s0 }
  0x20   : > { %p1488_p3 = scmp.lt.s32.totalorder %s1486_s21, %s1481_s15 }
  0x21   : > { %p1484_p12 = pnand %p1483_p10, %p1482_p2 }
  0x22   : > { %p1489_p5 = por %p1488_p3, %p1487_p0 }
  0x23   : > { %p1485_p13 = pneg %p1484_p12 }
  0x25   : > { %p1490_p11 = pnand %p1489_p5, %p1485_p13 }
  0x27   : > { %1493 = shalt.err (!%p1490_p11)
}
  0x28   : > { %s1584_s19 = smov 1024   ;;  %s1585_s30 = smov 512  }
  0x29   : > { %s1586_s8 = smov 32   ;;  %250 = sbr.rel (%p1672_p8) target bundleno = 894 (0x37e), region = 44 }
  0x2a   : > { %1371 = dma.hbm_to_vmem [thread:$0]  (!%p1707_p9), %s237_s7, 1024, %s239_s10, %s227_s13, %s1584_s19, %s1585_s30, %s1586_s8  }
  0x2b   : > { %s1724_s16 = sand.u32 (!%p1672_p8), 1, %s1571_s24  }
  0x2c   : > { %s1272_s14 = sshll.u32 (!%p1672_p8), %s1724_s16, 6  ;;  %s253_s15 = scalar_lea.sflag (!%p1672_p8), [#allocation4], %s1724_s16 }
  0x2d   : > { %s256_s20 = scalar_lea.vmem (!%p1672_p8), [#allocation3], %s1272_s14 }
  0x2e   : > { %1554 = dma.done.wait (%p1659_p4), %s253_s15, 1024  }
  0x2f   : > { %1556 = vsyncadd (%p1659_p4), %s253_s15, 4294966272 }
  0x30   : > { %1558 = dma.done.wait (%p46_p1), [#allocation7], 1536  }
  0x31   : > { %1560 = vsyncadd (%p46_p1), [#allocation7], 4294965760  ;;  %v1587_v1 = vmov 0   ;;  %vm342_vm0 = vcmask 1044480   ;;  %v305_v2 = vld [vmem:[%s256_s20 + $0x20] sm:$0x1f] }
  0x32   : > { %1423 = vset.pattern.permute.xlu1 %v1587_v1  ;;  %1422 = vset.pattern.permute.xlu0 %v1587_v1  ;;  %v306_v3 = vld [vmem:[%s256_s20 + $0x28] sm:$0x1f]  ;;  %v307_v4 = vld [vmem:[%s256_s20 + $0x30] sm:$0x1f]  ;;  %v308_v5 = vld [vmem:[%s256_s20 + $0x38] sm:$0x1f] }
  0x33   : > { %1275 = vmatpush.msk.msra.mxu0 %vm342_vm0, %v305_v2  ;;  %1280 = vmatpush.msk.msra.mxu1 %vm342_vm0, %v306_v3  ;;  %v301_v6 = vld [vmem:[%s256_s20] sm:$0xff]  ;;  %v302_v7 = vld [vmem:[%s256_s20 + $0x8] sm:$0xff]  ;;  %v303_v8 = vld [vmem:[%s256_s20 + $0x10] sm:$0xff]  ;;  %vm329_vm1 = vcmask 105472   ;;  %v1588_v31 = vmov 1   ;;  %vm507_vm2 = vcmask 261120  }
  0x34   : > { %1285 = vmatpush.msk.msra.mxu2 %vm342_vm0, %v307_v4  ;;  %1290 = vmatpush.msk.msra.mxu3 %vm342_vm0, %v308_v5  ;;  %v304_v9 = vld [vmem:[%s256_s20 + $0x18] sm:$0xff]  ;;  %v1744_v11 = vld [vmem:[%s1942_s3 + $0x8] sm:$0xff]  ;;  %v1768_v15 = vld [vmem:[%s1942_s3 + $0x10] sm:$0xff]  ;;  %vm1156_vm9 = vcmask 1040384   ;;  %s1274_s10 = sshll.u32 %s1724_s16, 2  ;;  %s1352_s11 = sshll.u32 %s1650_s5, 2 }
  0x35   : > { %v297_v10 = vld [vmem:[%s1940_s1] sm:$0xff]  ;;  %370 = vmatpush.msra.mxu0 %v301_v6  ;;  %399 = vmatpush.msra.mxu1 %v302_v7  ;;  %v1749_v12 = vld [vmem:[%s1942_s3 + $0x18] sm:$0xff]  ;;  %v298_v13 = vld [vmem:[%s1940_s1 + $0x8] sm:$0xff]  ;;  %s1179_s21 = scalar_lea.hbm %s1945_s6, %s1352_s11  ;;  %s290_s22 = scalar_lea.vmem [#allocation8], %s1274_s10 }
  0x36   : > { %428 = vmatpush.msra.mxu2 %v303_v8  ;;  %457 = vmatpush.msra.mxu3 %v304_v9  ;;  %v1763_v14 = vld [vmem:[%s1942_s3] sm:$0xff]  ;;  %v299_v16 = vld [vmem:[%s1940_s1 + $0x10] sm:$0xff]  ;;  %v300_v17 = vld [vmem:[%s1940_s1 + $0x18] sm:$0xff]  ;;  %s1181_s27 = sshll.u32 %s290_s22, 4  ;;  %s1183_s19 = sshll.u32 %s1179_s21, 4  ;;  %s1182_s27 = int_to_ptr.vmem [resolvable:$true] %s1181_s27  ;;  %s1184_s19 = int_to_ptr.hbm [resolvable:$true] %s1183_s19 }
  0x37   : > { %1276 = vmatmul.msk.f32.vlgmr.msra.gmra.mxu0 %vm329_vm1, %v297_v10  ;;  %1281 = vmatmul.msk.f32.vlgmr.msra.gmra.mxu1 %vm329_vm1, %v297_v10  ;;  %v487_v63 = vld [vmem:[#allocation6] sm:$0xff]  ;;  %v488_v9 = vld [vmem:[#allocation6 + $0x8] sm:$0xff]  ;;  %s1169_s30 = scalar_lea.sflag [#allocation5], %s1724_s16  ;;  %s1523_s8 = sshra.s32 %s1184_s19, 4  ;;  %s1524_s8 = int_to_ptr.hbm [resolvable:$true] %s1523_s8 }
  0x38   : > { %1286 = vmatmul.msk.f32.vlgmr.msra.gmra.mxu2 %vm329_vm1, %v297_v10  ;;  %1291 = vmatmul.msk.f32.vlgmr.msra.gmra.mxu3 %vm329_vm1, %v297_v10  ;;  %v489_v10 = vld [vmem:[#allocation6 + $0x10] sm:$0xff]  ;;  %s1525_s14 = scalar_lea.hbm %s1524_s8, 4  ;;  %s1529_s28 = scalar_lea.hbm %s1945_s6, 8 }
  0x39   : > { %316 = vperm.xlu1 %1423, %v1744_v11   ;;  %326 = vperm.xlu0 %1422, %v1749_v12   ;;  %p1526_p1 = scmp.ne.s32.totalorder %s1524_s8, %s1525_s14  ;;  %p1530_p11 = scmp.lt.s32.totalorder %s1524_s8, %s1945_s6 }
  0x3a   : > { %1424 = vset.pattern.permute.xlu2 %v1588_v31  ;;  %p1531_p9 = scmp.lt.s32.totalorder %s1529_s28, %s1525_s14 }
  0x3b   : > { %504 = vperm.xlu2 %1424, %v1749_v12   ;;  %p1527_p4 = pnand %p1526_p1, %p1696_p7 }
  0x3c   : > { %p1532_p2 = por %p1531_p9, %p1530_p11 }
  0x3d   : > { %p1528_p8 = pneg %p1527_p4 }
  0x3f   : > { %1277 = vmatmul.msk.f32.gmra.mxu0 %vm329_vm1, %v298_v13  ;;  %1282 = vmatmul.msk.f32.gmra.mxu1 %vm329_vm1, %v298_v13  ;;  %p1533_p10 = pnand %p1532_p2, %p1528_p8 }
  0x40   : > { %1287 = vmatmul.msk.f32.gmra.mxu2 %vm329_vm1, %v298_v13  ;;  %1292 = vmatmul.msk.f32.gmra.mxu3 %vm329_vm1, %v298_v13  ;;  %v490_v13 = vld [vmem:[#allocation6 + $0x18] sm:$0xff] }
  0x41   : > { %311 = vperm.xlu1 %1423, %v1763_v14   ;;  %321 = vperm.xlu0 %1422, %v1768_v15  }
  0x43   : > { %500 = vperm.xlu2 %1424, %v1768_v15  }
  0x47   : > { %1278 = vmatmul.msk.f32.gmra.mxu0 %vm329_vm1, %v299_v16  ;;  %1283 = vmatmul.msk.f32.gmra.mxu1 %vm329_vm1, %v299_v16 }
  0x48   : > { %1288 = vmatmul.msk.f32.gmra.mxu2 %vm329_vm1, %v299_v16  ;;  %1293 = vmatmul.msk.f32.gmra.mxu3 %vm329_vm1, %v299_v16 }
  0x49   : > { %1426 = vset.pattern.permute.xlu1 %v1588_v31  ;;  %1425 = vset.pattern.permute.xlu0 %v1588_v31 }
  0x4a   : > { %492 = vperm.xlu1 %1426, %v1763_v14   ;;  %496 = vperm.xlu0 %1425, %v1744_v11  }
  0x4f   : > { %1279 = vmatmul.msk.f32.gmra.mxu0 %vm329_vm1, %v300_v17  ;;  %1284 = vmatmul.msk.f32.gmra.mxu1 %vm329_vm1, %v300_v17 }
  0x50   : > { %1289 = vmatmul.msk.f32.gmra.mxu2 %vm329_vm1, %v300_v17  ;;  %1294 = vmatmul.msk.f32.gmra.mxu3 %vm329_vm1, %v300_v17 }
  0xab   : > { %v327_v24 = vpop.permute.xlu0 %326  ;;  %v317_v29 = vpop.permute.xlu1 %316 }
  0xb3   : > { %v322_v30 = vpop.permute.xlu0 %321  ;;  %v312_v42 = vpop.permute.xlu1 %311 }
  0xb4   : > { %v372_v18 = vpop.f32.mrf.mxu0  ;;  %v401_v19 = vpop.f32.mrf.mxu1 }
  0xb5   : > { %v373_v45 = vadd.f32 %v372_v18, %v312_v42  ;;  %v402_v46 = vadd.f32 %v401_v19, %v312_v42 }
  0xb7   : > { %v471_v57 = vmax.f32 %v373_v45, 0.0  ;;  %v472_v58 = vmax.f32 %v402_v46, 0.0 }
  0xbb   : > { %v1790_v20 = vpop.f32.mrf.mxu2  ;;  %v1792_v21 = vpop.f32.mrf.mxu3 }
  0xbc   : > { %v375_v22 = vpop.f32.mrf.mxu0  ;;  %v404_v23 = vpop.f32.mrf.mxu1  ;;  %v431_v3 = vadd.f32 %v1790_v20, %v312_v42  ;;  %v460_v4 = vadd.f32 %v1792_v21, %v312_v42 }
  0xbd   : > { %v376_v34 = vadd.f32 %v375_v22, %v317_v29  ;;  %v405_v35 = vadd.f32 %v404_v23, %v317_v29  ;;  %v505_v20 = vpop.permute.xlu2 %504 }
  0xbe   : > { %v473_v7 = vmax.f32 %v431_v3, 0.0  ;;  %v474_v8 = vmax.f32 %v460_v4, 0.0 }
  0xbf   : > { %v475_v47 = vmax.f32 %v376_v34, 0.0  ;;  %v476_v48 = vmax.f32 %v405_v35, 0.0 }
  0xc3   : > { %v433_v25 = vpop.f32.mrf.mxu2  ;;  %v462_v26 = vpop.f32.mrf.mxu3 }
  0xc4   : > { %v378_v27 = vpop.f32.mrf.mxu0  ;;  %v407_v28 = vpop.f32.mrf.mxu1  ;;  %v434_v59 = vadd.f32 %v433_v25, %v317_v29  ;;  %v463_v60 = vadd.f32 %v462_v26, %v317_v29 }
  0xc5   : > { %v379_v40 = vadd.f32 %v378_v27, %v322_v30  ;;  %v408_v41 = vadd.f32 %v407_v28, %v322_v30  ;;  %v501_v25 = vpop.permute.xlu2 %500  ;;  %v497_v28 = vpop.permute.xlu0 %496 }
  0xc6   : > { %v477_v5 = vmax.f32 %v434_v59, 0.0  ;;  %v478_v6 = vmax.f32 %v463_v60, 0.0 }
  0xc7   : > { %v479_v49 = vmax.f32 %v379_v40, 0.0  ;;  %v480_v50 = vmax.f32 %v408_v41, 0.0 }
  0xcb   : > { %v436_v32 = vpop.f32.mrf.mxu2  ;;  %v465_v33 = vpop.f32.mrf.mxu3 }
  0xcc   : > { %v381_v36 = vpop.f32.mrf.mxu0  ;;  %v410_v37 = vpop.f32.mrf.mxu1  ;;  %v437_v55 = vadd.f32 %v436_v32, %v322_v30  ;;  %v466_v56 = vadd.f32 %v465_v33, %v322_v30 }
  0xcd   : > { %v382_v38 = vadd.f32 %v381_v36, %v327_v24  ;;  %v411_v39 = vadd.f32 %v410_v37, %v327_v24  ;;  %v493_v33 = vpop.permute.xlu1 %492 }
  0xce   : > { %v481_v0 = vmax.f32 %v437_v55, 0.0  ;;  %v482_v2 = vmax.f32 %v466_v56, 0.0 }
  0xcf   : > { %v483_v43 = vmax.f32 %v382_v38, 0.0  ;;  %v484_v44 = vmax.f32 %v411_v39, 0.0 }
  0xd1   : > { %532 = vmatpush.msrb.mxu0 %v483_v43  ;;  %561 = vmatpush.msrb.mxu1 %v484_v44 }
  0xd3   : > { %v439_v51 = vpop.f32.mrf.mxu2  ;;  %v468_v52 = vpop.f32.mrf.mxu3  ;;  %533 = vmatpush.msrb.mxu0 %v479_v49  ;;  %562 = vmatpush.msrb.mxu1 %v480_v50 }
  0xd4   : > { %v440_v53 = vadd.f32 %v439_v51, %v327_v24  ;;  %v469_v54 = vadd.f32 %v468_v52, %v327_v24  ;;  %v653_v51 = vld [vmem:[#allocation6 + $0x20] sm:$0xff] }
  0xd5   : > { %534 = vmatpush.msrb.mxu0 %v475_v47  ;;  %563 = vmatpush.msrb.mxu1 %v476_v48  ;;  %v1589_v48 = vmov 2  }
  0xd6   : > { %v485_v61 = vmax.f32 %v440_v53, 0.0  ;;  %v486_v62 = vmax.f32 %v469_v54, 0.0  ;;  %1429 = vset.pattern.permute.xlu0 %v1589_v48  ;;  %1428 = vset.pattern.permute.xlu1 %v1589_v48 }
  0xd7   : > { %535 = vmatpush.msrb.mxu0 %v471_v57  ;;  %564 = vmatpush.msrb.mxu1 %v472_v58 }
  0xd8   : > { %590 = vmatpush.msrb.mxu2 %v485_v61  ;;  %619 = vmatpush.msrb.mxu3 %v486_v62 }
  0xd9   : > { %1299 = vmatmul.msk.f32.vlgmr.msrb.gmra.mxu1 %vm507_vm2, %v487_v63  ;;  %1295 = vmatmul.msk.f32.vlgmr.msrb.gmra.mxu0 %vm507_vm2, %v487_v63 }
  0xda   : > { %591 = vmatpush.msrb.mxu2 %v481_v0  ;;  %620 = vmatpush.msrb.mxu3 %v482_v2  ;;  %v654_v0 = vld [vmem:[#allocation6 + $0x28] sm:$0xff] }
  0xdb   : > { %658 = vperm.xlu0 %1429, %v1763_v14   ;;  %666 = vperm.xlu1 %1428, %v1768_v15  }
  0xdc   : > { %592 = vmatpush.msrb.mxu2 %v477_v5  ;;  %621 = vmatpush.msrb.mxu3 %v478_v6 }
  0xdd   : > { %1427 = vset.pattern.permute.xlu2 %v1589_v48 }
  0xde   : > { %593 = vmatpush.msrb.mxu2 %v473_v7  ;;  %622 = vmatpush.msrb.mxu3 %v474_v8  ;;  %v655_v7 = vld [vmem:[#allocation6 + $0x30] sm:$0xff]  ;;  %v656_v8 = vld [vmem:[#allocation6 + $0x38] sm:$0xff] }
  0xdf   : > { %1303 = vmatmul.msk.f32.vlgmr.msrb.gmra.mxu2 %vm507_vm2, %v487_v63  ;;  %1307 = vmatmul.msk.f32.vlgmr.msrb.gmra.mxu3 %vm507_vm2, %v487_v63 }
  0xe0   : > { %670 = vperm.xlu2 %1427, %v1749_v12  }
  0xe1   : > { %1300 = vmatmul.msk.f32.gmra.mxu1 %vm507_vm2, %v488_v9  ;;  %1296 = vmatmul.msk.f32.gmra.mxu0 %vm507_vm2, %v488_v9 }
  0xe3   : > { %1432 = vset.pattern.permute.xlu0 %v1587_v1 }
  0xe7   : > { %1304 = vmatmul.msk.f32.gmra.mxu2 %vm507_vm2, %v488_v9  ;;  %1308 = vmatmul.msk.f32.gmra.mxu3 %vm507_vm2, %v488_v9 }
  0xe8   : > { %662 = vperm.xlu2 %1427, %v1744_v11  }
  0xe9   : > { %1301 = vmatmul.msk.f32.gmra.mxu1 %vm507_vm2, %v489_v10  ;;  %1297 = vmatmul.msk.f32.gmra.mxu0 %vm507_vm2, %v489_v10 }
  0xef   : > { %1305 = vmatmul.msk.f32.gmra.mxu2 %vm507_vm2, %v489_v10  ;;  %1309 = vmatmul.msk.f32.gmra.mxu3 %vm507_vm2, %v489_v10 }
  0xf1   : > { %1302 = vmatmul.msk.f32.gmra.mxu1 %vm507_vm2, %v490_v13  ;;  %1298 = vmatmul.msk.f32.gmra.mxu0 %vm507_vm2, %v490_v13 }
  0xf7   : > { %1306 = vmatmul.msk.f32.gmra.mxu2 %vm507_vm2, %v490_v13  ;;  %1310 = vmatmul.msk.f32.gmra.mxu3 %vm507_vm2, %v490_v13 }
 0x156   : > { %v566_v16 = vpop.f32.mrf.mxu1  ;;  %v537_v17 = vpop.f32.mrf.mxu0 }
 0x157   : > { %v567_v38 = vadd.f32 %v566_v16, %v493_v33  ;;  %v538_v39 = vadd.f32 %v537_v17, %v493_v33  ;;  %v671_v17 = vpop.permute.xlu2 %670 }
 0x159   : > { %v637_v49 = vmax.f32 %v567_v38, 0.0  ;;  %v636_v50 = vmax.f32 %v538_v39, 0.0 }
 0x15e   : > { %v569_v18 = vpop.f32.mrf.mxu1  ;;  %v540_v19 = vpop.f32.mrf.mxu0 }
 0x15f   : > { %v570_v36 = vadd.f32 %v569_v18, %v497_v28  ;;  %v541_v37 = vadd.f32 %v540_v19, %v497_v28 }
 0x161   : > { %v641_v46 = vmax.f32 %v570_v36, 0.0  ;;  %v640_v47 = vmax.f32 %v541_v37, 0.0 }
 0x162   : > { %v1816_v21 = vpop.f32.mrf.mxu2  ;;  %v1818_v22 = vpop.f32.mrf.mxu3 }
 0x163   : > { %v596_v2 = vadd.f32 %v1816_v21, %v493_v33  ;;  %v625_v3 = vadd.f32 %v1818_v22, %v493_v33  ;;  %v667_v22 = vpop.permute.xlu1 %666 }
 0x165   : > { %v638_v1 = vmax.f32 %v596_v2, 0.0  ;;  %v639_v6 = vmax.f32 %v625_v3, 0.0  ;;  %v821_v2 = vld [vmem:[#allocation6 + $0x58] sm:$0xff] }
 0x166   : > { %v572_v23 = vpop.f32.mrf.mxu1  ;;  %v543_v24 = vpop.f32.mrf.mxu0 }
 0x167   : > { %v573_v29 = vadd.f32 %v572_v23, %v501_v25  ;;  %v544_v30 = vadd.f32 %v543_v24, %v501_v25  ;;  %v663_v23 = vpop.permute.xlu2 %662 }
 0x169   : > { %v645_v42 = vmax.f32 %v573_v29, 0.0  ;;  %v644_v43 = vmax.f32 %v544_v30, 0.0 }
 0x16a   : > { %v598_v26 = vpop.f32.mrf.mxu2  ;;  %v627_v27 = vpop.f32.mrf.mxu3 }
 0x16b   : > { %v599_v58 = vadd.f32 %v598_v26, %v497_v28  ;;  %v628_v59 = vadd.f32 %v627_v27, %v497_v28  ;;  %v659_v28 = vpop.permute.xlu0 %658 }
 0x16d   : > { %v642_v4 = vmax.f32 %v599_v58, 0.0  ;;  %v643_v5 = vmax.f32 %v628_v59, 0.0 }
 0x16e   : > { %v575_v31 = vpop.f32.mrf.mxu1  ;;  %v546_v32 = vpop.f32.mrf.mxu0 }
 0x16f   : > { %v576_v34 = vadd.f32 %v575_v31, %v505_v20  ;;  %v547_v35 = vadd.f32 %v546_v32, %v505_v20 }
 0x171   : > { %v649_v40 = vmax.f32 %v576_v34, 0.0  ;;  %v648_v41 = vmax.f32 %v547_v35, 0.0 }
 0x172   : > { %v601_v44 = vpop.f32.mrf.mxu2  ;;  %v630_v45 = vpop.f32.mrf.mxu3 }
 0x173   : > { %726 = vmatpush.msra.mxu1 %v649_v40  ;;  %697 = vmatpush.msra.mxu0 %v648_v41  ;;  %v602_v54 = vadd.f32 %v601_v44, %v501_v25  ;;  %v631_v55 = vadd.f32 %v630_v45, %v501_v25  ;;  %v1590_v45 = vmov 3  }
 0x174   : > { %1430 = vset.pattern.permute.xlu1 %v1590_v45  ;;  %1431 = vset.pattern.permute.xlu2 %v1590_v45 }
 0x175   : > { %727 = vmatpush.msra.mxu1 %v645_v42  ;;  %698 = vmatpush.msra.mxu0 %v644_v43  ;;  %v646_v62 = vmax.f32 %v602_v54, 0.0  ;;  %v647_v63 = vmax.f32 %v631_v55, 0.0 }
 0x176   : > { %835 = vperm.xlu1 %1430, %v1749_v12   ;;  %831 = vperm.xlu2 %1431, %v1768_v15  }
 0x177   : > { %728 = vmatpush.msra.mxu1 %v641_v46  ;;  %699 = vmatpush.msra.mxu0 %v640_v47  ;;  %v818_v46 = vld [vmem:[#allocation6 + $0x40] sm:$0xff] }
 0x179   : > { %729 = vmatpush.msra.mxu1 %v637_v49  ;;  %700 = vmatpush.msra.mxu0 %v636_v50  ;;  %v819_v49 = vld [vmem:[#allocation6 + $0x48] sm:$0xff] }
 0x17a   : > { %v604_v52 = vpop.f32.mrf.mxu2  ;;  %v633_v53 = vpop.f32.mrf.mxu3  ;;  %1315 = vmatmul.msk.f32.vlgmr.msra.gmra.mxu1 %vm507_vm2, %v653_v51  ;;  %1311 = vmatmul.msk.f32.vlgmr.msra.gmra.mxu0 %vm507_vm2, %v653_v51 }
 0x17b   : > { %v605_v56 = vadd.f32 %v604_v52, %v505_v20  ;;  %v634_v57 = vadd.f32 %v633_v53, %v505_v20 }
 0x17d   : > { %v650_v60 = vmax.f32 %v605_v56, 0.0  ;;  %v651_v61 = vmax.f32 %v634_v57, 0.0 }
 0x17e   : > { %827 = vperm.xlu1 %1430, %v1744_v11   ;;  %823 = vperm.xlu2 %1431, %v1763_v14  }
 0x17f   : > { %755 = vmatpush.msra.mxu2 %v650_v60  ;;  %784 = vmatpush.msra.mxu3 %v651_v61 }
 0x181   : > { %756 = vmatpush.msra.mxu2 %v646_v62  ;;  %785 = vmatpush.msra.mxu3 %v647_v63  ;;  %v820_v62 = vld [vmem:[#allocation6 + $0x50] sm:$0xff] }
 0x182   : > { %1316 = vmatmul.msk.f32.gmra.mxu1 %vm507_vm2, %v654_v0  ;;  %1312 = vmatmul.msk.f32.gmra.mxu0 %vm507_vm2, %v654_v0 }
 0x183   : > { %757 = vmatpush.msra.mxu2 %v642_v4  ;;  %786 = vmatpush.msra.mxu3 %v643_v5 }
 0x185   : > { %758 = vmatpush.msra.mxu2 %v638_v1  ;;  %787 = vmatpush.msra.mxu3 %v639_v6 }
 0x186   : > { %1319 = vmatmul.msk.f32.vlgmr.msra.gmra.mxu2 %vm507_vm2, %v653_v51  ;;  %1323 = vmatmul.msk.f32.vlgmr.msra.gmra.mxu3 %vm507_vm2, %v653_v51 }
 0x18a   : > { %1317 = vmatmul.msk.f32.gmra.mxu1 %vm507_vm2, %v655_v7  ;;  %1313 = vmatmul.msk.f32.gmra.mxu0 %vm507_vm2, %v655_v7 }
 0x18e   : > { %1320 = vmatmul.msk.f32.gmra.mxu2 %vm507_vm2, %v654_v0  ;;  %1324 = vmatmul.msk.f32.gmra.mxu3 %vm507_vm2, %v654_v0 }
 0x192   : > { %1318 = vmatmul.msk.f32.gmra.mxu1 %vm507_vm2, %v656_v8  ;;  %1314 = vmatmul.msk.f32.gmra.mxu0 %vm507_vm2, %v656_v8 }
 0x196   : > { %1321 = vmatmul.msk.f32.gmra.mxu2 %vm507_vm2, %v655_v7  ;;  %1325 = vmatmul.msk.f32.gmra.mxu3 %vm507_vm2, %v655_v7 }
 0x19e   : > { %1322 = vmatmul.msk.f32.gmra.mxu2 %vm507_vm2, %v656_v8  ;;  %1326 = vmatmul.msk.f32.gmra.mxu3 %vm507_vm2, %v656_v8 }
 0x1d0   : > { %v832_v7 = vpop.permute.xlu2 %831 }
 0x1e8   : > { %v836_v6 = vpop.permute.xlu1 %835 }
 0x1f7   : > { %v731_v9 = vpop.f32.mrf.mxu1  ;;  %v702_v10 = vpop.f32.mrf.mxu0 }
 0x1f8   : > { %v732_v35 = vadd.f32 %v731_v9, %v659_v28  ;;  %v703_v36 = vadd.f32 %v702_v10, %v659_v28  ;;  %v828_v10 = vpop.permute.xlu1 %827 }
 0x1fa   : > { %v802_v43 = vmax.f32 %v732_v35, 0.0  ;;  %v801_v44 = vmax.f32 %v703_v36, 0.0 }
 0x1ff   : > { %v734_v13 = vpop.f32.mrf.mxu1  ;;  %v705_v16 = vpop.f32.mrf.mxu0 }
 0x200   : > { %v735_v31 = vadd.f32 %v734_v13, %v663_v23  ;;  %v706_v32 = vadd.f32 %v705_v16, %v663_v23 }
 0x202   : > { %v806_v41 = vmax.f32 %v735_v31, 0.0  ;;  %v805_v42 = vmax.f32 %v706_v32, 0.0  ;;  %v983_v32 = vld [vmem:[#allocation2] sm:$0x1] }
 0x203   : > { %986 = vperm.xlu0 %1432, %v983_v32  }
 0x207   : > { %v737_v18 = vpop.f32.mrf.mxu1  ;;  %v708_v19 = vpop.f32.mrf.mxu0 }
 0x208   : > { %v738_v24 = vadd.f32 %v737_v18, %v667_v22  ;;  %v709_v25 = vadd.f32 %v708_v19, %v667_v22 }
 0x209   : > { %v760_v20 = vpop.f32.mrf.mxu2  ;;  %v789_v21 = vpop.f32.mrf.mxu3 }
 0x20a   : > { %v810_v39 = vmax.f32 %v738_v24, 0.0  ;;  %v809_v40 = vmax.f32 %v709_v25, 0.0  ;;  %v761_v58 = vadd.f32 %v760_v20, %v659_v28  ;;  %v790_v59 = vadd.f32 %v789_v21, %v659_v28 }
 0x20c   : > { %v803_v63 = vmax.f32 %v761_v58, 0.0  ;;  %v804_v0 = vmax.f32 %v790_v59, 0.0 }
 0x20f   : > { %v740_v26 = vpop.f32.mrf.mxu1  ;;  %v711_v27 = vpop.f32.mrf.mxu0 }
 0x210   : > { %v741_v29 = vadd.f32 %v740_v26, %v671_v17  ;;  %v712_v30 = vadd.f32 %v711_v27, %v671_v17 }
 0x211   : > { %v763_v33 = vpop.f32.mrf.mxu2  ;;  %v792_v34 = vpop.f32.mrf.mxu3 }
 0x212   : > { %v814_v37 = vmax.f32 %v741_v29, 0.0  ;;  %v813_v38 = vmax.f32 %v712_v30, 0.0  ;;  %v764_v12 = vadd.f32 %v763_v33, %v663_v23  ;;  %v793_v15 = vadd.f32 %v792_v34, %v663_v23  ;;  %v824_v23 = vpop.permute.xlu2 %823 }
 0x214   : > { %891 = vmatpush.msrb.mxu1 %v814_v37  ;;  %862 = vmatpush.msrb.mxu0 %v813_v38  ;;  %v807_v11 = vmax.f32 %v764_v12, 0.0  ;;  %v808_v14 = vmax.f32 %v793_v15, 0.0 }
 0x216   : > { %892 = vmatpush.msrb.mxu1 %v810_v39  ;;  %863 = vmatpush.msrb.mxu0 %v809_v40  ;;  %v982_v39 = vld [vmem:[%s1943_s4] sm:$0x1] }
 0x218   : > { %893 = vmatpush.msrb.mxu1 %v806_v41  ;;  %864 = vmatpush.msrb.mxu0 %v805_v42 }
 0x219   : > { %v766_v47 = vpop.f32.mrf.mxu2  ;;  %v795_v48 = vpop.f32.mrf.mxu3 }
 0x21a   : > { %894 = vmatpush.msrb.mxu1 %v802_v43  ;;  %865 = vmatpush.msrb.mxu0 %v801_v44  ;;  %v767_v52 = vadd.f32 %v766_v47, %v667_v22  ;;  %v796_v53 = vadd.f32 %v795_v48, %v667_v22 }
 0x21b   : > { %1331 = vmatmul.msk.f32.vlgmr.msrb.gmra.mxu1 %vm507_vm2, %v818_v46  ;;  %1327 = vmatmul.msk.f32.vlgmr.msrb.gmra.mxu0 %vm507_vm2, %v818_v46 }
 0x21c   : > { %v811_v60 = vmax.f32 %v767_v52, 0.0  ;;  %v812_v61 = vmax.f32 %v796_v53, 0.0 }
 0x221   : > { %v769_v50 = vpop.f32.mrf.mxu2  ;;  %v798_v51 = vpop.f32.mrf.mxu3 }
 0x222   : > { %v770_v54 = vadd.f32 %v769_v50, %v671_v17  ;;  %v799_v55 = vadd.f32 %v798_v51, %v671_v17 }
 0x223   : > { %1332 = vmatmul.msk.f32.gmra.mxu1 %vm507_vm2, %v819_v49  ;;  %1328 = vmatmul.msk.f32.gmra.mxu0 %vm507_vm2, %v819_v49 }
 0x224   : > { %v815_v56 = vmax.f32 %v770_v54, 0.0  ;;  %v816_v57 = vmax.f32 %v799_v55, 0.0 }
 0x226   : > { %920 = vmatpush.msrb.mxu2 %v815_v56  ;;  %949 = vmatpush.msrb.mxu3 %v816_v57 }
 0x228   : > { %921 = vmatpush.msrb.mxu2 %v811_v60  ;;  %950 = vmatpush.msrb.mxu3 %v812_v61 }
 0x22a   : > { %922 = vmatpush.msrb.mxu2 %v807_v11  ;;  %951 = vmatpush.msrb.mxu3 %v808_v14 }
 0x22b   : > { %1333 = vmatmul.msk.f32.gmra.mxu1 %vm507_vm2, %v820_v62  ;;  %1329 = vmatmul.msk.f32.gmra.mxu0 %vm507_vm2, %v820_v62 }
 0x22c   : > { %923 = vmatpush.msrb.mxu2 %v803_v63  ;;  %952 = vmatpush.msrb.mxu3 %v804_v0 }
 0x22d   : > { %1335 = vmatmul.msk.f32.vlgmr.msrb.gmra.mxu2 %vm507_vm2, %v818_v46  ;;  %1339 = vmatmul.msk.f32.vlgmr.msrb.gmra.mxu3 %vm507_vm2, %v818_v46 }
 0x233   : > { %1334 = vmatmul.msk.f32.gmra.mxu1 %vm507_vm2, %v821_v2  ;;  %1330 = vmatmul.msk.f32.gmra.mxu0 %vm507_vm2, %v821_v2 }
 0x235   : > { %1336 = vmatmul.msk.f32.gmra.mxu2 %vm507_vm2, %v819_v49  ;;  %1340 = vmatmul.msk.f32.gmra.mxu3 %vm507_vm2, %v819_v49 }
 0x23d   : > { %1337 = vmatmul.msk.f32.gmra.mxu2 %vm507_vm2, %v820_v62  ;;  %1341 = vmatmul.msk.f32.gmra.mxu3 %vm507_vm2, %v820_v62 }
 0x245   : > { %1338 = vmatmul.msk.f32.gmra.mxu2 %vm507_vm2, %v821_v2  ;;  %1342 = vmatmul.msk.f32.gmra.mxu3 %vm507_vm2, %v821_v2 }
 0x275   : > { %v987_v58 = vpop.permute.xlu0 %986 }
 0x276   : > { %v989_v59 = vperm.slane %v987_v58, 0 }
 0x298   : > { %v896_v3 = vpop.f32.mrf.mxu1  ;;  %v867_v4 = vpop.f32.mrf.mxu0 }
 0x299   : > { %v897_v27 = vadd.f32 %v896_v3, %v824_v23  ;;  %v868_v30 = vadd.f32 %v867_v4, %v824_v23 }
 0x29b   : > { %v967_v35 = vmax.f32 %v897_v27, 0.0  ;;  %v966_v37 = vmax.f32 %v868_v30, 0.0 }
 0x2a0   : > { %v899_v5 = vpop.f32.mrf.mxu1  ;;  %v870_v1 = vpop.f32.mrf.mxu0 }
 0x2a1   : > { %v900_v22 = vadd.f32 %v899_v5, %v828_v10  ;;  %v871_v25 = vadd.f32 %v870_v1, %v828_v10 }
 0x2a3   : > { %v971_v33 = vmax.f32 %v900_v22, 0.0  ;;  %v970_v34 = vmax.f32 %v871_v25, 0.0 }
 0x2a8   : > { %v902_v8 = vpop.f32.mrf.mxu1  ;;  %v873_v9 = vpop.f32.mrf.mxu0 }
 0x2a9   : > { %v903_v13 = vadd.f32 %v902_v8, %v832_v7  ;;  %v874_v16 = vadd.f32 %v873_v9, %v832_v7 }
 0x2ab   : > { %v975_v26 = vmax.f32 %v903_v13, 0.0  ;;  %v974_v29 = vmax.f32 %v874_v16, 0.0 }
 0x2b0   : > { %v905_v17 = vpop.f32.mrf.mxu1  ;;  %v925_v18 = vpop.f32.mrf.mxu2 }
 0x2b1   : > { %v906_v19 = vadd.f32 %v905_v17, %v836_v6  ;;  %v954_v20 = vpop.f32.mrf.mxu3  ;;  %v876_v21 = vpop.f32.mrf.mxu0  ;;  %v926_v52 = vadd.f32 %v925_v18, %v824_v23 }
 0x2b2   : > { %v877_v24 = vadd.f32 %v876_v21, %v836_v6  ;;  %v955_v54 = vadd.f32 %v954_v20, %v824_v23 }
 0x2b3   : > { %v979_v28 = vmax.f32 %v906_v19, 0.0  ;;  %v968_v56 = vmax.f32 %v926_v52, 0.0 }
 0x2b4   : > { %v978_v31 = vmax.f32 %v877_v24, 0.0  ;;  %v969_v57 = vmax.f32 %v955_v54, 0.0 }
 0x2b5   : > { %1025 = vmatpush.msra.mxu1 %v979_v28 }
 0x2b6   : > { %1005 = vmatpush.msra.mxu0 %v978_v31 }
 0x2b7   : > { %1026 = vmatpush.msra.mxu1 %v975_v26 }
 0x2b8   : > { %v928_v36 = vpop.f32.mrf.mxu2  ;;  %1006 = vmatpush.msra.mxu0 %v974_v29 }
 0x2b9   : > { %v957_v38 = vpop.f32.mrf.mxu3  ;;  %1027 = vmatpush.msra.mxu1 %v971_v33  ;;  %v929_v48 = vadd.f32 %v928_v36, %v828_v10 }
 0x2ba   : > { %1007 = vmatpush.msra.mxu0 %v970_v34  ;;  %v958_v50 = vadd.f32 %v957_v38, %v828_v10 }
 0x2bb   : > { %1028 = vmatpush.msra.mxu1 %v967_v35  ;;  %v972_v12 = vmax.f32 %v929_v48, 0.0 }
 0x2bc   : > { %1008 = vmatpush.msra.mxu0 %v966_v37  ;;  %1344 = vmatmul.msk.f32.vlgmr.msra.gmra.mxu1 %vm507_vm2, %v982_v39  ;;  %v973_v15 = vmax.f32 %v958_v50, 0.0 }
 0x2bd   : > { %1343 = vmatmul.msk.f32.vlgmr.msra.gmra.mxu0 %vm507_vm2, %v982_v39 }
 0x2c0   : > { %v931_v40 = vpop.f32.mrf.mxu2 }
 0x2c1   : > { %v960_v41 = vpop.f32.mrf.mxu3  ;;  %v932_v43 = vadd.f32 %v931_v40, %v832_v7 }
 0x2c2   : > { %v961_v46 = vadd.f32 %v960_v41, %v832_v7 }
 0x2c3   : > { %v976_v53 = vmax.f32 %v932_v43, 0.0 }
 0x2c4   : > { %v977_v55 = vmax.f32 %v961_v46, 0.0 }
 0x2c8   : > { %v934_v42 = vpop.f32.mrf.mxu2 }
 0x2c9   : > { %v935_v44 = vadd.f32 %v934_v42, %v836_v6  ;;  %v963_v45 = vpop.f32.mrf.mxu3 }
 0x2ca   : > { %v964_v47 = vadd.f32 %v963_v45, %v836_v6 }
 0x2cb   : > { %v980_v49 = vmax.f32 %v935_v44, 0.0 }
 0x2cc   : > { %v981_v51 = vmax.f32 %v964_v47, 0.0 }
 0x2cd   : > { %1045 = vmatpush.msra.mxu2 %v980_v49 }
 0x2ce   : > { %1065 = vmatpush.msra.mxu3 %v981_v51 }
 0x2cf   : > { %1046 = vmatpush.msra.mxu2 %v976_v53 }
 0x2d0   : > { %1066 = vmatpush.msra.mxu3 %v977_v55 }
 0x2d1   : > { %1047 = vmatpush.msra.mxu2 %v972_v12 }
 0x2d2   : > { %1067 = vmatpush.msra.mxu3 %v973_v15 }
 0x2d3   : > { %1048 = vmatpush.msra.mxu2 %v968_v56  ;;  %v1163_v56 = vlaneseq }
 0x2d4   : > { %1068 = vmatpush.msra.mxu3 %v969_v57  ;;  %1345 = vmatmul.msk.f32.vlgmr.msra.gmra.mxu2 %vm507_vm2, %v982_v39 }
 0x2d5   : > { %1346 = vmatmul.msk.f32.vlgmr.msra.gmra.mxu3 %vm507_vm2, %v982_v39 }
 0x339   : > { %v1030_v60 = vpop.f32.mrf.mxu1 }
 0x33a   : > { %v1031_v61 = vadd.f32 %v1030_v60, %v989_v59  ;;  %v1010_v11 = vpop.f32.mrf.mxu0 }
 0x33b   : > { %v1011_v62 = vadd.f32 %v1010_v11, %v989_v59 }
 0x33c   : > { %v1348_v14 = vmul.f32 -1.442695, %v1031_v61 }
 0x33d   : > { %v1347_v63 = vmul.f32 -1.442695, %v1011_v62 }
 0x33e   : > { %1433 = vpow2.f32 %v1348_v14 }
 0x33f   : > { %1435 = vpow2.f32 %v1347_v63 }
 0x344   : > { %v1434_v0 = vpop.eup %1433 }
 0x345   : > { %v1086_v2 = vadd.f32 1.0, %v1434_v0  ;;  %v1436_v3 = vpop.eup %1435 }
 0x346   : > { %v1085_v4 = vadd.f32 1.0, %v1436_v3 }
 0x347   : > { %1437 = vrcp.f32 %v1086_v2  ;;  %vm1109_vm3 = vweird.f32 %v1086_v2  ;;  %v1113_v25 = vand.u32 2147483647, %v1086_v2  ;;  %v1115_v26 = vand.u32 2147483648, %v1086_v2 }
 0x348   : > { %1439 = vrcp.f32 %v1085_v4  ;;  %vm1094_vm6 = vweird.f32 %v1085_v4  ;;  %v1098_v34 = vand.u32 2147483647, %v1085_v4  ;;  %v1100_v35 = vand.u32 2147483648, %v1085_v4 }
 0x349   : > { %vm1879_vm8 = vcmp.eq.f32.partialorder %v1113_v25, 8.507059e+37  ;;  %v1116_v37 = vor.u32 1.1754944e-38, %v1115_v26 }
 0x34a   : > { %vm1895_vm13 = vcmp.eq.f32.partialorder %v1098_v34, 8.507059e+37  ;;  %v1101_v51 = vor.u32 1.1754944e-38, %v1100_v35 }
 0x34d   : > { %v1438_v10 = vpop.eup %1437 }
 0x34e   : > { %v1105_v13 = vmul.f32 %v1438_v10, %v1086_v2  ;;  %v1870_v16 = vpop.eup %1439  ;;  %vm1110_vm4 = vweird.f32 %v1438_v10 }
 0x34f   : > { %v1090_v21 = vmul.f32 %v1870_v16, %v1085_v4  ;;  %vm1874_vm5 = vmor %vm1109_vm3, %vm1110_vm4  ;;  %vm1095_vm7 = vweird.f32 %v1870_v16  ;;  %vm1158_vm4 = vcmask 1042434  }
 0x350   : > { %v1106_v19 = vsub.f32 1.0, %v1105_v13  ;;  %vm1889_vm11 = vmor %vm1094_vm6, %vm1095_vm7  ;;  %vm1165_vm6 = vcmp.lt.s32.totalorder %v1163_v56, 512 }
 0x351   : > { %v1091_v24 = vsub.f32 1.0, %v1090_v21 }
 0x352   : > { %v1107_v23 = vmul.f32 %v1438_v10, %v1106_v19 }
 0x353   : > { %v1092_v29 = vmul.f32 %v1870_v16, %v1091_v24 }
 0x354   : > { %v1108_v28 = vadd.f32 %v1438_v10, %v1107_v23 }
 0x355   : > { %v1093_v41 = vadd.f32 %v1870_v16, %v1092_v29 }
 0x356   : > { %v1112_v42 = vsel %vm1874_vm5, %v1438_v10, %v1108_v28  ;;  %vm1160_vm5 = vcmask 1041408  }
 0x357   : > { %v1050_v5 = vpop.f32.mrf.mxu2  ;;  %v1117_v52 = vsel %vm1879_vm8, %v1116_v37, %v1112_v42  ;;  %v1097_v55 = vsel %vm1889_vm11, %v1870_v16, %v1093_v41 }
 0x358   : > { %v1051_v1 = vadd.f32 %v1050_v5, %v989_v59  ;;  %v1070_v6 = vpop.f32.mrf.mxu3  ;;  %v1102_v60 = vsel %vm1895_vm13, %v1101_v51, %v1097_v55 }
 0x359   : > { %v1071_v7 = vadd.f32 %v1070_v6, %v989_v59  ;;  %v1153_v59 = vrot.slane %v1117_v52, 7 }
 0x35a   : > { %v1349_v8 = vmul.f32 -1.442695, %v1051_v1 }
 0x35b   : > { %v1350_v9 = vmul.f32 -1.442695, %v1071_v7  ;;  %v1157_v62 = vsel %vm1156_vm9, %v1102_v60, %v1153_v59 }
 0x35c   : > { %1441 = vpow2.f32 %v1349_v8 }
 0x35d   : > { %1443 = vpow2.f32 %v1350_v9 }
 0x362   : > { %v1442_v17 = vpop.eup %1441 }
 0x363   : > { %v1444_v18 = vpop.eup %1443  ;;  %v1087_v20 = vadd.f32 1.0, %v1442_v17 }
 0x364   : > { %v1088_v22 = vadd.f32 1.0, %v1444_v18 }
 0x365   : > { %1445 = vrcp.f32 %v1087_v20  ;;  %v1130_v39 = vand.u32 2147483648, %v1087_v20  ;;  %v1128_v44 = vand.u32 2147483647, %v1087_v20  ;;  %vm1124_vm14 = vweird.f32 %v1087_v20 }
 0x366   : > { %1447 = vrcp.f32 %v1088_v22  ;;  %v1145_v45 = vand.u32 2147483648, %v1088_v22  ;;  %v1143_v48 = vand.u32 2147483647, %v1088_v22  ;;  %vm1139_vm0 = vweird.f32 %v1088_v22 }
 0x367   : > { %v1131_v53 = vor.u32 1.1754944e-38, %v1130_v39  ;;  %vm1129_vm1 = vcmp.eq.f32.partialorder %v1128_v44, 8.507059e+37 }
 0x368   : > { %v1146_v12 = vor.u32 1.1754944e-38, %v1145_v45  ;;  %vm1144_vm3 = vcmp.eq.f32.partialorder %v1143_v48, 8.507059e+37 }
 0x36b   : > { %v1446_v27 = vpop.eup %1445 }
 0x36c   : > { %v1448_v30 = vpop.eup %1447  ;;  %v1120_v32 = vmul.f32 %v1446_v27, %v1087_v20  ;;  %vm1125_vm10 = vweird.f32 %v1446_v27 }
 0x36d   : > { %v1135_v33 = vmul.f32 %v1448_v30, %v1088_v22  ;;  %vm1140_vm12 = vweird.f32 %v1448_v30  ;;  %vm1126_vm15 = vmor %vm1124_vm14, %vm1125_vm10 }
 0x36e   : > { %v1121_v38 = vsub.f32 1.0, %v1120_v32  ;;  %vm1141_vm2 = vmor %vm1139_vm0, %vm1140_vm12 }
 0x36f   : > { %v1136_v40 = vsub.f32 1.0, %v1135_v33 }
 0x370   : > { %v1122_v43 = vmul.f32 %v1446_v27, %v1121_v38 }
 0x371   : > { %v1137_v47 = vmul.f32 %v1448_v30, %v1136_v40 }
 0x372   : > { %v1123_v50 = vadd.f32 %v1446_v27, %v1122_v43 }
 0x373   : > { %v1138_v54 = vadd.f32 %v1448_v30, %v1137_v47 }
 0x374   : > { %v1127_v15 = vsel %vm1126_vm15, %v1446_v27, %v1123_v50 }
 0x375   : > { %v1132_v57 = vsel %vm1129_vm1, %v1131_v53, %v1127_v15  ;;  %v1142_v58 = vsel %vm1141_vm2, %v1448_v30, %v1138_v54 }
 0x376   : > { %v1147_v61 = vsel %vm1144_vm3, %v1146_v12, %v1142_v58  ;;  %v1154_v11 = vrot.slane %v1132_v57, 6 }
 0x377   : > { %v1155_v14 = vrot.slane %v1147_v61, 5 }
 0x379   : > { %v1159_v63 = vsel %vm1158_vm4, %v1154_v11, %v1155_v14 }
 0x37a   : > { %v1161_v0 = vsel %vm1160_vm5, %v1157_v62, %v1159_v63 }
 0x37b   : > { %1167 = vst.msk [vmem:[%s290_s22] sm:$0xf] %vm1165_vm6, %v1161_v0 }
 0x37c   : > { %1536 = shalt.err (!%p1533_p10)
}
 0x37d   : > { %1362 = dma.vmem_to_hbm [thread:$0]  (%p1696_p7), %s1182_s27, 64, %s1184_s19, %s1169_s30  }
 0x37e PF: > { %s1195_s16 = sand.u32 1, %s1567_s23   ;;  %p1959_p12 = scmp.ge.s32.totalorder %s1579_s26, 2 }
 0x37f   : > { %s1196_s10 = scalar_lea.sflag [#allocation5], %s1195_s16 }
 0x380   : > { %p1373_p13 = pnand %p1959_p12, %p1664_p6 }
 0x382   : > { %p1374_p0 = pneg %p1373_p13 }
 0x384   : > { %1562 = dma.done.wait (%p1374_p0), %s1196_s10, 64  }
 0x385   : > { %1564 = vsyncadd (%p1374_p0), %s1196_s10, 4294967232  ;;  %p22_p3 = scmp.ge.s32.totalorder %s1682_s12, 4   ;;  %s1960_s23 = smov %s1571_s24 }
 0x386   : > { %s1961_s24 = smov %s1575_s25  ;;  %s1962_s25 = smov %s1692_s17 }
 0x387   : > { %s1963_s26 = smov %s1682_s12  ;;  %24 = sbr.rel (!%p22_p3) target bundleno = 9 (0x9), region = 95 }
 0x38c   :  { %1202 = vsyncpa [#allocation4], 1 }
 0x38d   :  { %1204 = vsyncpa [#allocation4 + $0x1], 1 }
 0x38e   :  { %1205 = vsyncpa [#allocation7], 1 }
 0x38f   :  { %1206 = vsyncpa [#allocation5], 1 }
 0x390   :  { %1208 = vsyncpa [#allocation5 + $0x1], 1 }

</bundles_post_ra>
